<compile_context>
chip_gen: v6e
topology: v6e:2x2x1
jax: 0.10.0
libtpu: 0.0.40
codegen_flags: <defaults>
</compile_context>

<pallas_src>
import math
import functools

import jax
import jax.numpy as jnp
from jax.experimental import pallas as pl
from jax.experimental.pallas import tpu as pltpu


def _gelu_exact(x):
    # torch.nn.GELU() default is the exact (erf-based) GELU.
    return 0.5 * x * (1.0 + jax.lax.erf(x / math.sqrt(2.0)))


def _round_up(a, b):
    return (a + b - 1) // b * b


def mlp_kernel(x_ref, wfc_ref, bfc_ref, wproj_ref, bproj_ref, o_ref, acc_ref):
    # x_ref:     (tm, width)        compute dtype
    # wfc_ref:   (width, tk)        compute dtype
    # bfc_ref:   (1, tk)            f32
    # wproj_ref: (tk, width)        compute dtype
    # bproj_ref: (1, width)         f32
    # o_ref:     (tm, width)        output dtype
    # acc_ref:   (tm, width)        f32 accumulator, resident across the k axis
    k = pl.program_id(1)

    @pl.when(k == 0)
    def _init():
        acc_ref[...] = jnp.zeros_like(acc_ref)

    # First matmul on this hidden chunk only; accumulate in f32 on the MXU.
    h = jnp.dot(x_ref[...], wfc_ref[...], preferred_element_type=jnp.float32)
    h = h + bfc_ref[...].astype(jnp.float32)
    # GELU / cast on the (tm, tk) chunk only (overlaps with next weight DMA).
    h = _gelu_exact(h)
    acc_ref[...] += jnp.dot(h.astype(wproj_ref.dtype), wproj_ref[...],
                            preferred_element_type=jnp.float32)

    @pl.when(k == pl.num_programs(1) - 1)
    def _finalize():
        o_ref[...] = (acc_ref[...] + bproj_ref[...].astype(jnp.float32)
                      ).astype(o_ref.dtype)


def mlp_pallas(x, w_fc, b_fc, w_proj, b_proj, *,
               tile_n=256, tile_k=512, compute_dtype=jnp.bfloat16):
    """x: (N, width).  w_fc: (width, 4*width), w_proj: (4*width, width).

    Returns (N, width) in x.dtype.  Matmul operands are cast to
    `compute_dtype` (bf16 for MXU-native rate); accumulation, biases and GELU
    stay in f32.
    """
    n, width = x.shape
    hidden = w_fc.shape[1]
    out_dtype = x.dtype

    # --- tile sizing -------------------------------------------------------
    # Row tile: as large as requested, but never bigger than the (8-padded) N.
    tm = min(tile_n, _round_up(n, 8))
    n_pad = _round_up(n, tm)

    # Hidden tile: multiple of 128 lanes that divides `hidden`.
    tk = min(tile_k, hidden)
    if hidden % tk != 0:
        tk = hidden  # fallback for odd hidden sizes (toy shapes are fine)

    # --- prepare operands --------------------------------------------------
    x_p = x
    if n_pad != n:
        x_p = jnp.pad(x, ((0, n_pad - n), (0, 0)))
    x_c = x_p.astype(compute_dtype)
    wfc_c = w_fc.astype(compute_dtype)
    wproj_c = w_proj.astype(compute_dtype)
    bfc2 = b_fc.reshape(1, hidden).astype(jnp.float32)
    bproj2 = b_proj.reshape(1, width).astype(jnp.float32)

    cbytes = jnp.dtype(compute_dtype).itemsize
    obytes = jnp.dtype(out_dtype).itemsize

    # --- VMEM budget (double-buffered inputs/outputs + scratch) ------------
    vmem_need = (
        2 * tm * width * cbytes        # x tile
        + 2 * width * tk * cbytes      # W_fc tile
        + 2 * tk * 4                   # b_fc tile
        + 2 * tk * width * cbytes      # W_proj tile
        + 2 * width * 4                # b_proj
        + 2 * tm * width * obytes      # out tile
        + tm * width * 4               # f32 accumulator scratch
        + tm * tk * 4                  # f32 h chunk (temporaries)
    )
    vmem_limit = int(min(max(vmem_need * 3 // 2, 32 * 1024 * 1024),
                         64 * 1024 * 1024))  # 64 MiB cap is legal on v7x too

    # --- advisory cost estimate for the XLA scheduler -----------------------
    cost = pl.CostEstimate(
        flops=2 * n_pad * width * hidden * 2,          # two matmuls
        transcendentals=n_pad * hidden,                # erf per hidden activation
        bytes_accessed=(n_pad * width * (cbytes + obytes)
                        + 2 * width * hidden * cbytes
                        + hidden * 4 + width * 4),
    )

    grid = (n_pad // tm, hidden // tk)  # reduction axis last

    out_p = pl.pallas_call(
        mlp_kernel,
        out_shape=jax.ShapeDtypeStruct((n_pad, width), out_dtype),
        grid_spec=pltpu.PrefetchScalarGridSpec(
            num_scalar_prefetch=0,
            grid=grid,
            in_specs=[
                pl.BlockSpec((tm, width), lambda i, k: (i, 0)),     # x
                pl.BlockSpec((width, tk), lambda i, k: (0, k)),     # W_fc slice
                pl.BlockSpec((1, tk), lambda i, k: (0, k)),         # b_fc slice
                pl.BlockSpec((tk, width), lambda i, k: (k, 0)),     # W_proj slice
                pl.BlockSpec((1, width), lambda i, k: (0, 0)),      # b_proj
            ],
            out_specs=pl.BlockSpec((tm, width), lambda i, k: (i, 0)),
            scratch_shapes=[pltpu.VMEM((tm, width), jnp.float32)],
        ),
        compiler_params=pltpu.CompilerParams(
            dimension_semantics=("parallel", "arbitrary"),
            vmem_limit_bytes=vmem_limit,
        ),
        cost_estimate=cost,
    )(x_c, wfc_c, bfc2, wproj_c, bproj2)

    return out_p[:n] if n_pad != n else out_p


if __name__ == "__main__":
    # Small shapes consistent with the module: batch=2, seq=8, width=32.
    batch, seq, width = 2, 8, 32
    hidden = width * 4
    init_scale = 0.25

    key = jax.random.PRNGKey(0)
    k_x, k_wfc, k_wproj = jax.random.split(key, 3)

    x = jax.random.normal(k_x, (batch, seq, width), dtype=jnp.float32)

    # nn.init.normal_(weight, std=init_scale); bias zero.
    # Stored as (in, out) = transpose of torch's (out, in) layout.
    w_fc = init_scale * jax.random.normal(k_wfc, (width, hidden), dtype=jnp.float32)
    b_fc = jnp.zeros((hidden,), dtype=jnp.float32)
    w_proj = init_scale * jax.random.normal(k_wproj, (hidden, width), dtype=jnp.float32)
    b_proj = jnp.zeros((width,), dtype=jnp.float32)

    x_flat = x.reshape(batch * seq, width)
    ref = (_gelu_exact(x_flat @ w_fc + b_fc)) @ w_proj + b_proj

    # f32 matmul path: exact numerics vs the reference.
    out_f32 = mlp_pallas(x_flat, w_fc, b_fc, w_proj, b_proj,
                         tile_n=256, tile_k=512, compute_dtype=jnp.float32)
    jax.block_until_ready(out_f32)
    assert jnp.allclose(out_f32, ref, atol=1e-4, rtol=1e-4), "f32 mismatch vs reference"

    # bf16 matmul path (MXU-native rate), f32 accumulation/GELU: looser tolerance.
    out_bf16 = mlp_pallas(x_flat, w_fc, b_fc, w_proj, b_proj,
                          tile_n=256, tile_k=512, compute_dtype=jnp.bfloat16)
    jax.block_until_ready(out_bf16)
    assert jnp.allclose(out_bf16, ref, atol=5e-2, rtol=5e-2), "bf16 mismatch vs reference"

    out = out_f32.reshape(batch, seq, width)
    jax.block_until_ready(out)
    print("KERNEL_OK")
</pallas_src>

<mosaic_0001>
module attributes {stable_mosaic.version = 11 : i64} {
  func.func @mlp_kernel(%arg0: i32, %arg1: i32, %arg2: memref<16x32xf32, #tpu.memory_space<vmem>>, %arg3: memref<32x128xf32, #tpu.memory_space<vmem>>, %arg4: memref<1x128xf32, #tpu.memory_space<vmem>>, %arg5: memref<128x32xf32, #tpu.memory_space<vmem>>, %arg6: memref<1x32xf32, #tpu.memory_space<vmem>>, %arg7: memref<16x32xf32, #tpu.memory_space<vmem>>, %arg8: memref<16x32xf32, #tpu.memory_space<vmem>>) attributes {dimension_semantics = [#tpu.dimension_semantics<parallel>, #tpu.dimension_semantics<arbitrary>], iteration_bounds = array<i64: 1, 1>, scalar_prefetch = 0 : i64, scratch_operands = 1 : i64, tpu.core_type = #tpu.core_type<tc>, window_params = [{transform_indices = @transform_0, window_bounds = array<i64: 16, 32>}, {transform_indices = @transform_1, window_bounds = array<i64: 32, 128>}, {transform_indices = @transform_2, window_bounds = array<i64: 1, 128>}, {transform_indices = @transform_3, window_bounds = array<i64: 128, 32>}, {pipeline_mode = #tpu.pipeline_mode<synchronous>, transform_indices = @transform_4, window_bounds = array<i64: 1, 32>}, {transform_indices = @transform_5, window_bounds = array<i64: 16, 32>}]} {
    %c0_i32 = arith.constant 0 : i32
    %0 = arith.cmpi eq, %arg1, %c0_i32 : i32
    %1 = arith.extui %0 : i1 to i32
    %c0_i32_0 = arith.constant 0 : i32
    %2 = arith.cmpi ne, %1, %c0_i32_0 : i32
    scf.if %2 {
      %cst_18 = arith.constant 0.000000e+00 : f32
      %25 = vector.broadcast %cst_18 : f32 to vector<16x32xf32>
      %c0_19 = arith.constant 0 : index
      %c0_20 = arith.constant 0 : index
      %26 = vector.load %arg8[%c0_19, %c0_20] : memref<16x32xf32, #tpu.memory_space<vmem>>, vector<16x32xf32>
      tpu.vector_store %arg8[%c0_19, %c0_20], %25 {strides = array<i32>} : memref<16x32xf32, #tpu.memory_space<vmem>>, vector<16x32xf32>,
    } else {
    }
    %c0 = arith.constant 0 : index
    %c0_1 = arith.constant 0 : index
    %3 = vector.load %arg2[%c0, %c0_1] : memref<16x32xf32, #tpu.memory_space<vmem>>, vector<16x32xf32>
    %c0_2 = arith.constant 0 : index
    %c0_3 = arith.constant 0 : index
    %4 = vector.load %arg3[%c0_2, %c0_3] : memref<32x128xf32, #tpu.memory_space<vmem>>, vector<32x128xf32>
    %cst = arith.constant dense<0.000000e+00> : vector<16x128xf32>
    %5 = tpu.matmul %3, %4, %cst {dimension_numbers = #tpu.dot_dimension_numbers<[1], [0], [0], [1], [0, 0, 1, 1], [], []>} : vector<16x32xf32>, vector<32x128xf32>, vector<16x128xf32> -> vector<16x128xf32>
    %c0_4 = arith.constant 0 : index
    %c0_5 = arith.constant 0 : index
    %6 = vector.load %arg4[%c0_4, %c0_5] : memref<1x128xf32, #tpu.memory_space<vmem>>, vector<1x128xf32>
    %7 = vector.broadcast %6 : vector<1x128xf32> to vector<16x128xf32>
    %8 = arith.addf %5, %7 : vector<16x128xf32>
    %cst_6 = arith.constant 5.000000e-01 : f32
    %9 = vector.broadcast %cst_6 : f32 to vector<16x128xf32>
    %10 = arith.mulf %9, %8 : vector<16x128xf32>
    %cst_7 = arith.constant 1.41421354 : f32
    %11 = vector.broadcast %cst_7 : f32 to vector<16x128xf32>
    %12 = arith.divf %8, %11 : vector<16x128xf32>
    %13 = math.erf %12 : vector<16x128xf32>
    %cst_8 = arith.constant 1.000000e+00 : f32
    %14 = vector.broadcast %cst_8 : f32 to vector<16x128xf32>
    %15 = arith.addf %14, %13 : vector<16x128xf32>
    %16 = arith.mulf %10, %15 : vector<16x128xf32>
    %c0_9 = arith.constant 0 : index
    %c0_10 = arith.constant 0 : index
    %17 = vector.load %arg8[%c0_9, %c0_10] : memref<16x32xf32, #tpu.memory_space<vmem>>, vector<16x32xf32>
    %c0_11 = arith.constant 0 : index
    %c0_12 = arith.constant 0 : index
    %18 = vector.load %arg5[%c0_11, %c0_12] : memref<128x32xf32, #tpu.memory_space<vmem>>, vector<128x32xf32>
    %cst_13 = arith.constant dense<0.000000e+00> : vector<16x32xf32>
    %19 = tpu.matmul %16, %18, %cst_13 {dimension_numbers = #tpu.dot_dimension_numbers<[1], [0], [0], [1], [0, 0, 1, 1], [], []>} : vector<16x128xf32>, vector<128x32xf32>, vector<16x32xf32> -> vector<16x32xf32>
    %20 = arith.addf %17, %19 : vector<16x32xf32>
    %c0_14 = arith.constant 0 : index
    %c0_15 = arith.constant 0 : index
    %21 = vector.load %arg8[%c0_14, %c0_15] : memref<16x32xf32, #tpu.memory_space<vmem>>, vector<16x32xf32>
    tpu.vector_store %arg8[%c0_14, %c0_15], %20 {strides = array<i32>} : memref<16x32xf32, #tpu.memory_space<vmem>>, vector<16x32xf32>,
    %c0_i32_16 = arith.constant 0 : i32
    %22 = arith.cmpi eq, %arg1, %c0_i32_16 : i32
    %23 = arith.extui %22 : i1 to i32
    %c0_i32_17 = arith.constant 0 : i32
    %24 = arith.cmpi ne, %23, %c0_i32_17 : i32
    scf.if %24 {
      %c0_18 = arith.constant 0 : index
      %c0_19 = arith.constant 0 : index
      %25 = vector.load %arg8[%c0_18, %c0_19] : memref<16x32xf32, #tpu.memory_space<vmem>>, vector<16x32xf32>
      %c0_20 = arith.constant 0 : index
      %c0_21 = arith.constant 0 : index
      %26 = vector.load %arg6[%c0_20, %c0_21] : memref<1x32xf32, #tpu.memory_space<vmem>>, vector<1x32xf32>
      %27 = vector.broadcast %26 : vector<1x32xf32> to vector<16x32xf32>
      %28 = arith.addf %25, %27 : vector<16x32xf32>
      %c0_22 = arith.constant 0 : index
      %c0_23 = arith.constant 0 : index
      %29 = vector.load %arg7[%c0_22, %c0_23] : memref<16x32xf32, #tpu.memory_space<vmem>>, vector<16x32xf32>
      tpu.vector_store %arg7[%c0_22, %c0_23], %28 {strides = array<i32>} : memref<16x32xf32, #tpu.memory_space<vmem>>, vector<16x32xf32>,
    } else {
    }
    return
  }
  func.func @transform_0(%arg0: i32, %arg1: i32) -> (i32, i32) {
    %c0_i32 = arith.constant 0 : i32
    %c0_i32_0 = arith.constant 0 : i32
    return %arg0, %c0_i32 : i32, i32
  }
  func.func @transform_1(%arg0: i32, %arg1: i32) -> (i32, i32) {
    %c0_i32 = arith.constant 0 : i32
    %c0_i32_0 = arith.constant 0 : i32
    return %c0_i32, %arg1 : i32, i32
  }
  func.func @transform_2(%arg0: i32, %arg1: i32) -> (i32, i32) {
    %c0_i32 = arith.constant 0 : i32
    %c0_i32_0 = arith.constant 0 : i32
    return %c0_i32, %arg1 : i32, i32
  }
  func.func @transform_3(%arg0: i32, %arg1: i32) -> (i32, i32) {
    %c0_i32 = arith.constant 0 : i32
    %c0_i32_0 = arith.constant 0 : i32
    return %arg1, %c0_i32 : i32, i32
  }
  func.func @transform_4(%arg0: i32, %arg1: i32) -> (i32, i32) {
    %c0_i32 = arith.constant 0 : i32
    %c0_i32_0 = arith.constant 0 : i32
    %c0_i32_1 = arith.constant 0 : i32
    return %c0_i32, %c0_i32_0 : i32, i32
  }
  func.func @transform_5(%arg0: i32, %arg1: i32) -> (i32, i32) {
    %c0_i32 = arith.constant 0 : i32
    %c0_i32_0 = arith.constant 0 : i32
    return %arg0, %c0_i32 : i32, i32
  }
}

</mosaic_0001>

<bundles_post_ra>
// kernel: tpu_custom_call.1
= control target key start
LH: loop header
LB: loop body
LE: loop exit
PB: predicated region body
PF: predicated region fallthrough
CT: control target
= control target key end

     0   :  { %vm25_vm0 = vcmask 261120   ;;  %s484_s0 = inlined_call_operand.vmem [shape: f32[16,32], index: 0, kind: input, shape index: {}]   ;;  %s485_s1 = inlined_call_operand.vmem [shape: f32[32,128], index: 1, kind: input, shape index: {}]   ;;  %s486_s2 = inlined_call_operand.vmem [shape: f32[1,128], index: 2, kind: input, shape index: {}]   ;;  %s487_s3 = inlined_call_operand.vmem [shape: f32[128,32], index: 3, kind: input, shape index: {}]   ;;  %s488_s4 = inlined_call_operand.vmem [shape: f32[1,32], index: 4, kind: input, shape index: {}]   ;;  %s489_s5 = inlined_call_operand.hbm [shape: f32[16,32], index: 5, kind: output, shape index: {}]  }
   0x1   :  { %v33_v0 = vld [vmem:[%s485_s1 + $0x18] sm:$0xff]  ;;  %v32_v1 = vld [vmem:[%s485_s1 + $0x10] sm:$0xff]  ;;  %v28_v2 = vld [vmem:[%s484_s0] sm:$0xff] }
   0x2   :  { %291 = vmatprep.subr.mxu0 %v33_v0  ;;  %v31_v3 = vld [vmem:[%s485_s1 + $0x8] sm:$0xff]  ;;  %299 = vmatprep.mubr.msk.f32.mxu0 %vm25_vm0, %v28_v2  ;;  %v151_v4 = vld [vmem:[%s487_s3 + $0x78] sm:$0xff]  ;;  %v150_v5 = vld [vmem:[%s487_s3 + $0x70] sm:$0xff] }
   0x3   :  { %292 = vmatpush3.msra.mxu0 %v33_v0  ;;  %302 = vmatprep.subr.mxu1 %v151_v4 }
   0x4   :  { %293 = vmatprep.subr.mxu0 %v32_v1 }
   0x5   :  { %10 = vsyncpa [#allocation4], 0  ;;  %294 = vmatpush3.msra.mxu0 %v32_v1  ;;  %v30_v6 = vld [vmem:[%s485_s1] sm:$0xff]  ;;  %303 = vmatpush3.msra.mxu1 %v151_v4  ;;  %v149_v7 = vld [vmem:[%s487_s3 + $0x68] sm:$0xff]  ;;  %v367_v22 = vmov 0.0   ;;  %s368_s11 = smov [#allocation3]  }
   0x6   :  { %295 = vmatprep.subr.mxu0 %v31_v3  ;;  %304 = vmatprep.subr.mxu1 %v150_v5  ;;  %v29_v8 = vld [vmem:[%s484_s0 + $0x8] sm:$0xff]  ;;  %v148_v9 = vld [vmem:[%s487_s3 + $0x60] sm:$0xff]  ;;  %v147_v10 = vld [vmem:[%s487_s3 + $0x58] sm:$0xff]  ;;  %27 = vst.msk [vmem:[#allocation2 + $0x8] sm:$0xff] %vm25_vm0, %v367_v22  ;;  %s252_s12 = sshll.u32 %s368_s11, 4  ;;  %s253_s12 = int_to_ptr.vmem [resolvable:$true] %s252_s12 }
   0x7   :  { %296 = vmatpush3.msra.mxu0 %v31_v3  ;;  %305 = vmatpush3.msra.mxu1 %v150_v5  ;;  %v146_v11 = vld [vmem:[%s487_s3 + $0x50] sm:$0xff]  ;;  %v145_v12 = vld [vmem:[%s487_s3 + $0x48] sm:$0xff]  ;;  %v144_v13 = vld [vmem:[%s487_s3 + $0x40] sm:$0xff]  ;;  %26 = vst.msk [vmem:[#allocation2] sm:$0xff] %vm25_vm0, %v367_v22  ;;  %s345_s13 = scalar_lea.vmem %s253_s12, 256  ;;  %p350_p1 = scmp.lt.s32.totalorder %s253_s12, %s253_s12 }
   0x8   :  { %297 = vmatprep.subr.mxu0 %v30_v6  ;;  %306 = vmatprep.subr.mxu1 %v149_v7  ;;  %v143_v14 = vld [vmem:[%s487_s3 + $0x38] sm:$0xff]  ;;  %v142_v15 = vld [vmem:[%s487_s3 + $0x30] sm:$0xff]  ;;  %v141_v16 = vld [vmem:[%s487_s3 + $0x28] sm:$0xff]  ;;  %p346_p0 = scmp.ne.s32.totalorder %s253_s12, %s345_s13  ;;  %p351_p2 = scmp.lt.s32.totalorder %s345_s13, %s345_s13 }
   0x9   :  { %298 = vmatpush3.msra.mxu0 %v30_v6  ;;  %307 = vmatpush3.msra.mxu1 %v149_v7  ;;  %v140_v17 = vld [vmem:[%s487_s3 + $0x20] sm:$0xff]  ;;  %v139_v18 = vld [vmem:[%s487_s3 + $0x18] sm:$0xff]  ;;  %v138_v19 = vld [vmem:[%s487_s3 + $0x10] sm:$0xff] }
   0xa   :  { %300 = vmatmul.mubr.msk.f32.vlgmr.msra.gmra.mxu0 %vm25_vm0, %v29_v8  ;;  %308 = vmatprep.subr.mxu1 %v148_v9  ;;  %v137_v20 = vld [vmem:[%s487_s3 + $0x8] sm:$0xff]  ;;  %v136_v21 = vld [vmem:[%s487_s3] sm:$0xff]  ;;  %p352_p3 = por %p351_p2, %p350_p1 }
   0xb   :  { %309 = vmatpush3.msra.mxu1 %v148_v9  ;;  %v263_v23 = vld [vmem:[%s486_s2] ss:$0 sm:$0xff] }
   0xc   :  { %310 = vmatprep.subr.mxu1 %v147_v10  ;;  %v266_v44 = vld [vmem:[%s488_s4] ss:$0 sm:$0xff]  ;;  %p353_p4 = pnand %p352_p3, %p346_p0 }
   0xd   :  { %311 = vmatpush3.msra.mxu1 %v147_v10  ;;  %v135_v38 = vld [vmem:[#allocation2 + $0x8] sm:$0xff] }
   0xe   :  { %312 = vmatprep.subr.mxu1 %v146_v11  ;;  %v134_v40 = vld [vmem:[#allocation2] sm:$0xff] }
   0xf   :  { %313 = vmatpush3.msra.mxu1 %v146_v11 }
  0x10   :  { %314 = vmatprep.subr.mxu1 %v145_v12 }
  0x11   :  { %315 = vmatpush3.msra.mxu1 %v145_v12 }
  0x12   :  { %316 = vmatprep.subr.mxu1 %v144_v13 }
  0x13   :  { %317 = vmatpush3.msra.mxu1 %v144_v13 }
  0x14   :  { %318 = vmatprep.subr.mxu1 %v143_v14 }
  0x15   :  { %319 = vmatpush3.msra.mxu1 %v143_v14 }
  0x16   :  { %320 = vmatprep.subr.mxu1 %v142_v15 }
  0x17   :  { %321 = vmatpush3.msra.mxu1 %v142_v15 }
  0x18   :  { %322 = vmatprep.subr.mxu1 %v141_v16 }
  0x19   :  { %323 = vmatpush3.msra.mxu1 %v141_v16 }
  0x1a   :  { %324 = vmatprep.subr.mxu1 %v140_v17 }
  0x1b   :  { %325 = vmatpush3.msra.mxu1 %v140_v17 }
  0x1c   :  { %326 = vmatprep.subr.mxu1 %v139_v18 }
  0x1d   :  { %327 = vmatpush3.msra.mxu1 %v139_v18 }
  0x1e   :  { %328 = vmatprep.subr.mxu1 %v138_v19 }
  0x1f   :  { %329 = vmatpush3.msra.mxu1 %v138_v19 }
  0x20   :  { %330 = vmatprep.subr.mxu1 %v137_v20 }
  0x21   :  { %331 = vmatpush3.msra.mxu1 %v137_v20 }
  0x22   :  { %332 = vmatprep.subr.mxu1 %v136_v21 }
  0x23   :  { %333 = vmatpush3.msra.mxu1 %v136_v21 }
  0xca   :  { %v301_v24 = vpop.f32.mrf.mxu0 }
  0xcb   :  { %v120_v25 = vadd.f32 %v301_v24, %v263_v23 }
  0xcc   :  { %v114_v26 = vpop.f32.mrf.mxu0 }
  0xcd   :  { %v127_v27 = vmul.f32 0.70710677, %v120_v25  ;;  %v115_v28 = vadd.f32 %v263_v23, %v114_v26  ;;  %v124_v35 = vmul.f32 0.5, %v120_v25 }
  0xcf   :  { %341 = verf.f32 %v127_v27  ;;  %v126_v29 = vmul.f32 0.70710677, %v115_v28  ;;  %v123_v33 = vmul.f32 0.5, %v115_v28 }
  0xd1   :  { %343 = verf.f32 %v126_v29 }
  0xdc   :  { %v342_v30 = vpop.eup %341 }
  0xdd   :  { %v131_v32 = vadd.f32 1.0, %v342_v30 }
  0xde   :  { %v344_v31 = vpop.eup %343 }
  0xdf   :  { %v130_v34 = vadd.f32 1.0, %v344_v31  ;;  %v133_v37 = vmul.f32 %v131_v32, %v124_v35 }
  0xe1   :  { %v132_v36 = vmul.f32 %v130_v34, %v123_v33 }
  0xe3   :  { %334 = vmatprep.mubr.f32.mxu1 %v132_v36 }
  0xe4   :  { %335 = vmatmul.mubr.f32.vlgmr.msra.gmra.mxu1 %v133_v37 }
 0x1a4   :  { %v336_v39 = vpop.f32.mrf.mxu1 }
 0x1a5   :  { %v228_v41 = vadd.f32 %v336_v39, %v135_v38 }
 0x1a6   :  { %v218_v42 = vpop.f32.mrf.mxu1 }
 0x1a7   :  { %230 = vst.msk [vmem:[#allocation2 + $0x8] sm:$0xff] %vm25_vm0, %v228_v41  ;;  %v227_v43 = vadd.f32 %v218_v42, %v134_v40 }
 0x1a9   :  { %229 = vst.msk [vmem:[#allocation2] sm:$0xff] %vm25_vm0, %v227_v43 }
 0x1ae   :  { %v235_v45 = vld [vmem:[#allocation2 + $0x8] sm:$0xff] }
 0x1af   :  { %v244_v46 = vadd.f32 %v266_v44, %v235_v45 }
 0x1b0   :  { %v234_v47 = vld [vmem:[#allocation2] sm:$0xff] }
 0x1b1   :  { %v243_v48 = vadd.f32 %v266_v44, %v234_v47  ;;  %246 = vst.msk [vmem:[#allocation3 + $0x8] sm:$0xff] %vm25_vm0, %v244_v46 }
 0x1b3   :  { %245 = vst.msk [vmem:[#allocation3] sm:$0xff] %vm25_vm0, %v243_v48 }
 0x1b4   :  { %356 = shalt.err (!%p353_p4)
}
 0x1b5   :  { %s369_s0 = smov 128   ;;  %s370_s4 = smov 8  }
 0x1b6   :  { %258 = dma.vmem_to_hbm [thread:$0]  %s253_s12, 256, %s489_s5, [#allocation4], %s369_s0, %s369_s0, %s370_s4  }
 0x1b7   :  { %365 = dma.done.wait [#allocation4], 256  }
 0x1b8   :  { %366 = vsyncadd [#allocation4], 4294967040 }
 0x1b9   :  { %262 = vsyncpa [#allocation4], 1 }

</bundles_post_ra>
